<compile_context>
chip_gen: v5e
topology: v5e:2x2
jax: 0.10.0
libtpu: 0.0.40
codegen_flags: <defaults>
</compile_context>

<pallas_src>
from functools import partial

import jax
import jax.numpy as jnp
from jax.experimental import pallas as pl
from jax.experimental.pallas import tpu as pltpu

_EPS = float(jnp.finfo(jnp.float32).eps)


def _round_up(v, m):
    return -(-v // m) * m


# ---------------------------------------------------------------------------
# Fused Pallas kernel: ONE grid step, static unrolled loop over crops.
#   crops [0, n_glob)          -> global transform (mixup+noise fused term, RRC, fader)
#   crops [n_glob, n_crops)    -> local transform (RRC only)
# Per-global-crop scalars (scale = (1-lam)*(1-alpha)) live in SMEM.
# ---------------------------------------------------------------------------
def _crops_kernel(x_ref, add_ref, wfbd_ref, wt_ref, ramp_ref, scal_ref, out_ref,
                  *, n_glob, n_crops, f_pad):
    x = x_ref[...]                                   # (F_in, T_in) f32
    ex = jnp.exp(x)                                  # ONE exp, shared by all global crops
    x_bf = x.astype(jnp.bfloat16) if n_crops > n_glob else None

    pres = []
    for c in range(n_crops):                         # static unroll (n_crops is tiny)
        if c < n_glob:
            # Fused MixupBYOLA + MixGaussianNoise (additive term precomputed outside the
            # kernel):  mixed = log(max(scale*exp(x) + add, eps))
            mixed = jnp.log(jnp.maximum(scal_ref[c] * ex + add_ref[c], _EPS))
            pres.append(mixed.astype(jnp.bfloat16))
        else:
            # Local crops bypass mixup/noise/fader entirely (structural skip, no gating).
            pres.append(x_bf)
    pre_stack = jnp.concatenate(pres, axis=0)        # (n_crops*F_in, T_in) bf16

    # RandomResizeCrop, frequency axis: ONE block-diagonal MXU call for all crops.
    tmp = jnp.dot(wfbd_ref[...], pre_stack,
                  preferred_element_type=jnp.float32).astype(jnp.bfloat16)

    # RandomResizeCrop, time axis (per crop; Wt differ) + RandomLinearFader (global only).
    for c in range(n_crops):
        resized = jnp.dot(tmp[c * f_pad:(c + 1) * f_pad], wt_ref[c],
                          preferred_element_type=jnp.float32)
        if c < n_glob:
            resized = resized + ramp_ref[c]
        out_ref[c] = resized


def _fused_crops_call(x2d, add, wf_bd, wt, ramp, scal, *, n_glob, n_crops, f_pad, t_pad):
    fi, ti = x2d.shape
    kernel = partial(_crops_kernel, n_glob=n_glob, n_crops=n_crops, f_pad=f_pad)
    return pl.pallas_call(
        kernel,
        out_shape=jax.ShapeDtypeStruct((n_crops, f_pad, t_pad), jnp.float32),
        grid=(1,),                                               # single fat step
        in_specs=[
            pl.BlockSpec((fi, ti), lambda i: (0, 0)),                        # x
            pl.BlockSpec((n_glob, fi, ti), lambda i: (0, 0, 0)),             # fused add term
            pl.BlockSpec((n_crops * f_pad, n_crops * fi), lambda i: (0, 0)), # block-diag Wf (bf16)
            pl.BlockSpec((n_crops, ti, t_pad), lambda i: (0, 0, 0)),         # Wt (bf16)
            pl.BlockSpec((n_glob, 1, t_pad), lambda i: (0, 0, 0)),           # fader ramps
            pl.BlockSpec(memory_space=pltpu.MemorySpace.SMEM),               # per-crop scales
        ],
        out_specs=pl.BlockSpec((n_crops, f_pad, t_pad), lambda i: (0, 0, 0)),
    )(x2d, add, wf_bd, wt, ramp, scal)


# ---------------------------------------------------------------------------
# On-device (jitted, vectorized) construction of augmentation parameters.
# ---------------------------------------------------------------------------
def _resize_matrix(in_len, out_len, crop_start, crop_len, canvas_offset):
    """(out_len, in_len) interpolation matrix for: place input on a zero-padded virtual
    canvas at `canvas_offset`, crop [crop_start, crop_start+crop_len), resize to out_len
    with align_corners-style two-tap (bilinear) interpolation.  crop_start / crop_len are
    traced int32 scalars; everything is vectorized (no Python per-element loops).
    # TODO(synk): BYOL-A RandomResizeCrop uses bicubic F.interpolate; separable
    # bilinear weights are used here.
    """
    o = jnp.arange(out_len, dtype=jnp.float32)
    denom = float(out_len - 1) if out_len > 1 else 1.0
    frac = o * (crop_len.astype(jnp.float32) - 1.0) / denom
    src = crop_start.astype(jnp.float32) + frac - float(canvas_offset)
    f0 = jnp.floor(src)
    w1 = src - f0
    w0 = 1.0 - w1
    f0i = f0.astype(jnp.int32)[:, None]                       # (out_len, 1)
    cols = jnp.arange(in_len, dtype=jnp.int32)[None, :]       # (1, in_len)
    eq0 = (cols == f0i).astype(jnp.float32)                   # OOB taps drop to zero
    eq1 = (cols == f0i + 1).astype(jnp.float32)
    return w0[:, None] * eq0 + w1[:, None] * eq1


def _rrc_matrices(key, in_size, out_size, virtual_crop_scale, freq_scale, time_scale,
                  f_pad, t_pad):
    fi, ti = in_size
    fo, to = out_size
    canvas_f = int(fi * virtual_crop_scale[0])
    canvas_t = int(ti * virtual_crop_scale[1])
    k1, k2, k3, k4 = jax.random.split(key, 4)
    hs = jax.random.uniform(k1, (), minval=freq_scale[0], maxval=freq_scale[1])
    ws = jax.random.uniform(k2, (), minval=time_scale[0], maxval=time_scale[1])
    h = jnp.clip(jnp.floor(hs * fi).astype(jnp.int32), 1, canvas_f)
    w = jnp.clip(jnp.floor(ws * ti).astype(jnp.int32), 1, canvas_t)
    i0 = jnp.floor(jax.random.uniform(k3, ()) *
                   (canvas_f - h + 1).astype(jnp.float32)).astype(jnp.int32)
    j0 = jnp.floor(jax.random.uniform(k4, ()) *
                   (canvas_t - w + 1).astype(jnp.float32)).astype(jnp.int32)
    off_f = (canvas_f - fi) // 2
    off_t = (canvas_t - ti) // 2
    wf = _resize_matrix(fi, fo, i0, h, off_f)                  # (fo, fi)
    wt = _resize_matrix(ti, to, j0, w, off_t).T                # (ti, to)
    wf = jnp.pad(wf, ((0, f_pad - fo), (0, 0)))                # zero rows past F_out
    wt = jnp.pad(wt, ((0, 0), (0, t_pad - to)))                # zero cols past T_out
    return wf.astype(jnp.bfloat16), wt.astype(jnp.bfloat16)    # MXU consumes bf16 directly


def _global_crop_params(key, in_size, out_size, mixup_ratio, gauss_noise_ratio,
                        crop_scale, virtual_crop_scale, f_pad, t_pad):
    fi, ti = in_size
    keys = jax.random.split(key, 6)
    alpha = mixup_ratio * jax.random.uniform(keys[0], ())
    # TODO(synk): MixupBYOLA's stateful memory bank has no Pallas equivalent; a
    # synthetic random "past log-mel sample" stands in for the bank entry.
    z = jax.random.normal(keys[1], (fi, ti), jnp.float32)
    lam = gauss_noise_ratio * jax.random.uniform(keys[2], ())
    noise = jax.random.normal(keys[3], (fi, ti), jnp.float32)
    # Fused MixupBYOLA + MixGaussianNoise in the linear domain (precomputed off the
    # kernel's EUP path):  mixed = log(scale*exp(x) + add)
    #   mixup:  lin = (1-alpha)*exp(x) + alpha*exp(z) + eps
    #   noise:  (1-lam)*lin + lam*N(0,1) + eps   (BYOL-A adds zero-mean noise, std=lam)
    add = (1.0 - lam) * alpha * jnp.exp(z) + lam * noise + (2.0 - lam) * _EPS
    scale = (1.0 - lam) * (1.0 - alpha)
    wf, wt = _rrc_matrices(keys[4], in_size, out_size, virtual_crop_scale,
                           crop_scale, crop_scale, f_pad, t_pad)
    ht = 2.0 * jax.random.uniform(keys[5], (2,)) - 1.0          # fader gain = 1.0
    to = out_size[1]
    t = jnp.arange(to, dtype=jnp.float32) / float(to - 1 if to > 1 else 1)
    ramp = ht[0] + (ht[1] - ht[0]) * t                           # linspace(head, tail, to)
    ramp = jnp.pad(ramp, (0, t_pad - to)).reshape(1, t_pad)
    return add, wf, wt, ramp, scale


def _local_crop_params(key, in_size, out_size, crop_scale, f_pad, t_pad):
    return _rrc_matrices(key, in_size, out_size, (1.0, 1.0),
                         crop_scale, crop_scale, f_pad, t_pad)


# ---------------------------------------------------------------------------
# AudioPairTransform forward (single jitted device program: params + fused kernel)
# ---------------------------------------------------------------------------
@partial(jax.jit, static_argnames=("n_mels", "crop_frames", "local_crops_number",
                                   "local_crops_size", "virtual_crop_scale",
                                   "mixup_ratio", "gauss_noise_ratio",
                                   "global_crop_scale", "local_crop_scale",
                                   "multi_transform"))
def _audio_pair_transform_impl(x2d, key, *, n_mels, crop_frames, local_crops_number,
                               local_crops_size, virtual_crop_scale, mixup_ratio,
                               gauss_noise_ratio, global_crop_scale, local_crop_scale,
                               multi_transform):
    in_size = x2d.shape
    fi, ti = in_size
    g_out = (n_mels, crop_frames)
    l_out = (int(local_crops_size[0]), int(local_crops_size[1]))
    n_glob = 2 if multi_transform else 1
    n_loc = local_crops_number if multi_transform else 0
    n_crops = n_glob + n_loc

    max_f = max(g_out[0], l_out[0]) if n_loc else g_out[0]
    max_t = max(g_out[1], l_out[1]) if n_loc else g_out[1]
    f_pad = _round_up(max_f, 8)          # sublane-aligned output rows
    t_pad = _round_up(max_t, 128)        # lane-dense output (unmasked stores, full-N MXU)

    keys = jax.random.split(key, n_crops)
    adds, ramps, scales, wfs, wts = [], [], [], [], []
    for g in range(n_glob):
        add, wf, wt, ramp, scale = _global_crop_params(
            keys[g], in_size, g_out, mixup_ratio, gauss_noise_ratio,
            global_crop_scale, virtual_crop_scale, f_pad, t_pad)
        adds.append(add); wfs.append(wf); wts.append(wt)
        ramps.append(ramp); scales.append(scale)
    for l in range(n_loc):
        wf, wt = _local_crop_params(keys[n_glob + l], in_size, l_out,
                                    local_crop_scale, f_pad, t_pad)
        wfs.append(wf); wts.append(wt)

    add = jnp.stack(adds)                                     # (n_glob, F, T)   f32
    ramp = jnp.stack(ramps)                                   # (n_glob, 1, Tp)  f32
    scal = jnp.stack(scales).astype(jnp.float32)              # (n_glob,)        f32 -> SMEM
    wt = jnp.stack(wts)                                       # (n_crops, T, Tp) bf16

    # Block-diagonal frequency-resize matrix: all crops in ONE MXU call.
    wf_bd = jnp.zeros((n_crops * f_pad, n_crops * fi), jnp.bfloat16)
    for c in range(n_crops):
        wf_bd = wf_bd.at[c * f_pad:(c + 1) * f_pad, c * fi:(c + 1) * fi].set(wfs[c])

    out = _fused_crops_call(x2d, add, wf_bd, wt, ramp, scal,
                            n_glob=n_glob, n_crops=n_crops,
                            f_pad=f_pad, t_pad=t_pad)          # (n_crops, f_pad, t_pad)

    crops = []
    for g in range(n_glob):
        crops.append(out[g, :g_out[0], :g_out[1]][None])
    for l in range(n_loc):
        crops.append(out[n_glob + l, :l_out[0], :l_out[1]][None])
    return tuple(crops)


def audio_pair_transform(x, key, *,
                         n_mels=16, crop_frames=96,
                         local_crops_number=2, local_crops_size=(16, 48),
                         virtual_crop_scale=(1.0, 1.5),
                         mixup_ratio=0.2, gauss_noise_ratio=0.2,
                         global_crop_scale=(0.6, 1.5), local_crop_scale=(0.05, 0.6),
                         multi_transform=True):
    """x: (C=1, n_mels, frames) float32 log-mel spectrogram (PyTorch layout)."""
    assert x.ndim == 3 and x.shape[0] == 1 and x.shape[1] == n_mels
    crops = _audio_pair_transform_impl(
        x[0], key,
        n_mels=int(n_mels), crop_frames=int(crop_frames),
        local_crops_number=int(local_crops_number),
        local_crops_size=tuple(int(v) for v in local_crops_size),
        virtual_crop_scale=tuple(float(v) for v in virtual_crop_scale),
        mixup_ratio=float(mixup_ratio), gauss_noise_ratio=float(gauss_noise_ratio),
        global_crop_scale=tuple(float(v) for v in global_crop_scale),
        local_crop_scale=tuple(float(v) for v in local_crop_scale),
        multi_transform=bool(multi_transform))
    return list(crops) if multi_transform else crops[0]


if __name__ == "__main__":
    key = jax.random.PRNGKey(0)
    kx, kaug = jax.random.split(key)
    # small shapes: (C=1, n_mels=16, frames=128)
    x = jax.random.normal(kx, (1, 16, 128), dtype=jnp.float32)

    crops = audio_pair_transform(
        x, kaug,
        n_mels=16, crop_frames=96,
        local_crops_number=2, local_crops_size=(16, 48),
        virtual_crop_scale=(1.0, 1.5),
        multi_transform=True,
    )

    for c in crops:
        jax.block_until_ready(c)

    assert crops[0].shape == (1, 16, 96) and crops[1].shape == (1, 16, 96)
    assert crops[2].shape == (1, 16, 48) and crops[3].shape == (1, 16, 48)
    assert all(bool(jnp.all(jnp.isfinite(c))) for c in crops)
    print("KERNEL_OK")
</pallas_src>

<mosaic_0001>
module attributes {stable_mosaic.version = 11 : i64} {
  func.func @_crops_kernel(%arg0: i32, %arg1: memref<16x128xf32, #tpu.memory_space<vmem>>, %arg2: memref<2x16x128xf32, #tpu.memory_space<vmem>>, %arg3: memref<64x64xbf16, #tpu.memory_space<vmem>>, %arg4: memref<4x128x128xbf16, #tpu.memory_space<vmem>>, %arg5: memref<2x1x128xf32, #tpu.memory_space<vmem>>, %arg6: memref<2xf32, #tpu.memory_space<smem>>, %arg7: memref<4x16x128xf32, #tpu.memory_space<vmem>>) attributes {dimension_semantics = [#tpu.dimension_semantics<arbitrary>], iteration_bounds = array<i64: 1>, scalar_prefetch = 0 : i64, scratch_operands = 0 : i64, tpu.core_type = #tpu.core_type<tc>, window_params = [{pipeline_mode = #tpu.pipeline_mode<synchronous>, transform_indices = @transform_0, window_bounds = array<i64: 16, 128>}, {pipeline_mode = #tpu.pipeline_mode<synchronous>, transform_indices = @transform_1, window_bounds = array<i64: 2, 16, 128>}, {pipeline_mode = #tpu.pipeline_mode<synchronous>, transform_indices = @transform_2, window_bounds = array<i64: 64, 64>}, {pipeline_mode = #tpu.pipeline_mode<synchronous>, transform_indices = @transform_3, window_bounds = array<i64: 4, 128, 128>}, {pipeline_mode = #tpu.pipeline_mode<synchronous>, transform_indices = @transform_4, window_bounds = array<i64: 2, 1, 128>}, {transform_indices = @transform_5, window_bounds = array<i64: 2>}, {pipeline_mode = #tpu.pipeline_mode<synchronous>, transform_indices = @transform_6, window_bounds = array<i64: 4, 16, 128>}]} {
    %c0 = arith.constant 0 : index
    %c0_0 = arith.constant 0 : index
    %0 = vector.load %arg1[%c0, %c0_0] : memref<16x128xf32, #tpu.memory_space<vmem>>, vector<16x128xf32>
    %1 = math.exp %0 : vector<16x128xf32>
    %2 = arith.truncf %0 : vector<16x128xf32> to vector<16x128xbf16>
    %c0_1 = arith.constant 0 : index
    %3 = memref.load %arg6[%c0_1] : memref<2xf32, #tpu.memory_space<smem>>
    %4 = vector.broadcast %3 : f32 to vector<16x128xf32>
    %5 = arith.mulf %4, %1 : vector<16x128xf32>
    %c0_2 = arith.constant 0 : index
    %c0_3 = arith.constant 0 : index
    %c0_4 = arith.constant 0 : index
    %6 = vector.load %arg2[%c0_2, %c0_3, %c0_4] : memref<2x16x128xf32, #tpu.memory_space<vmem>>, vector<1x16x128xf32>
    %7 = vector.shape_cast %6 : vector<1x16x128xf32> to vector<16x128xf32>
    %8 = arith.addf %5, %7 : vector<16x128xf32>
    %cst = arith.constant 1.1920929E-7 : f32
    %9 = vector.broadcast %cst : f32 to vector<16x128xf32>
    %10 = arith.maximumf %8, %9 : vector<16x128xf32>
    %11 = math.log %10 : vector<16x128xf32>
    %12 = arith.truncf %11 : vector<16x128xf32> to vector<16x128xbf16>
    %c1 = arith.constant 1 : index
    %13 = memref.load %arg6[%c1] : memref<2xf32, #tpu.memory_space<smem>>
    %14 = vector.broadcast %13 : f32 to vector<16x128xf32>
    %15 = arith.mulf %14, %1 : vector<16x128xf32>
    %c1_5 = arith.constant 1 : index
    %c0_6 = arith.constant 0 : index
    %c0_7 = arith.constant 0 : index
    %16 = vector.load %arg2[%c1_5, %c0_6, %c0_7] : memref<2x16x128xf32, #tpu.memory_space<vmem>>, vector<1x16x128xf32>
    %17 = vector.shape_cast %16 : vector<1x16x128xf32> to vector<16x128xf32>
    %18 = arith.addf %15, %17 : vector<16x128xf32>
    %cst_8 = arith.constant 1.1920929E-7 : f32
    %19 = vector.broadcast %cst_8 : f32 to vector<16x128xf32>
    %20 = arith.maximumf %18, %19 : vector<16x128xf32>
    %21 = math.log %20 : vector<16x128xf32>
    %22 = arith.truncf %21 : vector<16x128xf32> to vector<16x128xbf16>
    %23 = tpu.concatenate %12, %22, %2, %2 in 0 : vector<16x128xbf16>, vector<16x128xbf16>, vector<16x128xbf16>, vector<16x128xbf16> -> vector<64x128xbf16>
    %c0_9 = arith.constant 0 : index
    %c0_10 = arith.constant 0 : index
    %24 = vector.load %arg3[%c0_9, %c0_10] : memref<64x64xbf16, #tpu.memory_space<vmem>>, vector<64x64xbf16>
    %cst_11 = arith.constant dense<0.000000e+00> : vector<64x128xf32>
    %25 = tpu.matmul %24, %23, %cst_11 {dimension_numbers = #tpu.dot_dimension_numbers<[1], [0], [0], [1], [0, 0, 1, 1], [], []>} : vector<64x64xbf16>, vector<64x128xbf16>, vector<64x128xf32> -> vector<64x128xf32>
    %26 = arith.truncf %25 : vector<64x128xf32> to vector<64x128xbf16>
    %27 = vector.extract_strided_slice %26 {offsets = [0, 0], sizes = [16, 128], strides = [1, 1]} : vector<64x128xbf16> to vector<16x128xbf16>
    %c0_12 = arith.constant 0 : index
    %c0_13 = arith.constant 0 : index
    %c0_14 = arith.constant 0 : index
    %28 = vector.load %arg4[%c0_12, %c0_13, %c0_14] : memref<4x128x128xbf16, #tpu.memory_space<vmem>>, vector<1x128x128xbf16>
    %29 = vector.shape_cast %28 : vector<1x128x128xbf16> to vector<128x128xbf16>
    %cst_15 = arith.constant dense<0.000000e+00> : vector<16x128xf32>
    %30 = tpu.matmul %27, %29, %cst_15 {dimension_numbers = #tpu.dot_dimension_numbers<[1], [0], [0], [1], [0, 0, 1, 1], [], []>} : vector<16x128xbf16>, vector<128x128xbf16>, vector<16x128xf32> -> vector<16x128xf32>
    %c0_16 = arith.constant 0 : index
    %c0_17 = arith.constant 0 : index
    %c0_18 = arith.constant 0 : index
    %31 = vector.load %arg5[%c0_16, %c0_17, %c0_18] : memref<2x1x128xf32, #tpu.memory_space<vmem>>, vector<1x1x128xf32>
    %32 = vector.shape_cast %31 : vector<1x1x128xf32> to vector<1x128xf32>
    %33 = vector.broadcast %32 : vector<1x128xf32> to vector<16x128xf32>
    %34 = arith.addf %30, %33 : vector<16x128xf32>
    %c0_19 = arith.constant 0 : index
    %c0_20 = arith.constant 0 : index
    %c0_21 = arith.constant 0 : index
    %35 = vector.load %arg7[%c0_19, %c0_20, %c0_21] : memref<4x16x128xf32, #tpu.memory_space<vmem>>, vector<1x16x128xf32>
    %36 = vector.shape_cast %35 : vector<1x16x128xf32> to vector<16x128xf32>
    %37 = vector.shape_cast %34 : vector<16x128xf32> to vector<1x16x128xf32>
    tpu.vector_store %arg7[%c0_19, %c0_20, %c0_21], %37 {strides = array<i32>} : memref<4x16x128xf32, #tpu.memory_space<vmem>>, vector<1x16x128xf32>,
    %38 = vector.extract_strided_slice %26 {offsets = [16, 0], sizes = [16, 128], strides = [1, 1]} : vector<64x128xbf16> to vector<16x128xbf16>
    %c1_22 = arith.constant 1 : index
    %c0_23 = arith.constant 0 : index
    %c0_24 = arith.constant 0 : index
    %39 = vector.load %arg4[%c1_22, %c0_23, %c0_24] : memref<4x128x128xbf16, #tpu.memory_space<vmem>>, vector<1x128x128xbf16>
    %40 = vector.shape_cast %39 : vector<1x128x128xbf16> to vector<128x128xbf16>
    %cst_25 = arith.constant dense<0.000000e+00> : vector<16x128xf32>
    %41 = tpu.matmul %38, %40, %cst_25 {dimension_numbers = #tpu.dot_dimension_numbers<[1], [0], [0], [1], [0, 0, 1, 1], [], []>} : vector<16x128xbf16>, vector<128x128xbf16>, vector<16x128xf32> -> vector<16x128xf32>
    %c1_26 = arith.constant 1 : index
    %c0_27 = arith.constant 0 : index
    %c0_28 = arith.constant 0 : index
    %42 = vector.load %arg5[%c1_26, %c0_27, %c0_28] : memref<2x1x128xf32, #tpu.memory_space<vmem>>, vector<1x1x128xf32>
    %43 = vector.shape_cast %42 : vector<1x1x128xf32> to vector<1x128xf32>
    %44 = vector.broadcast %43 : vector<1x128xf32> to vector<16x128xf32>
    %45 = arith.addf %41, %44 : vector<16x128xf32>
    %c1_29 = arith.constant 1 : index
    %c0_30 = arith.constant 0 : index
    %c0_31 = arith.constant 0 : index
    %46 = vector.load %arg7[%c1_29, %c0_30, %c0_31] : memref<4x16x128xf32, #tpu.memory_space<vmem>>, vector<1x16x128xf32>
    %47 = vector.shape_cast %46 : vector<1x16x128xf32> to vector<16x128xf32>
    %48 = vector.shape_cast %45 : vector<16x128xf32> to vector<1x16x128xf32>
    tpu.vector_store %arg7[%c1_29, %c0_30, %c0_31], %48 {strides = array<i32>} : memref<4x16x128xf32, #tpu.memory_space<vmem>>, vector<1x16x128xf32>,
    %49 = vector.extract_strided_slice %26 {offsets = [32, 0], sizes = [16, 128], strides = [1, 1]} : vector<64x128xbf16> to vector<16x128xbf16>
    %c2 = arith.constant 2 : index
    %c0_32 = arith.constant 0 : index
    %c0_33 = arith.constant 0 : index
    %50 = vector.load %arg4[%c2, %c0_32, %c0_33] : memref<4x128x128xbf16, #tpu.memory_space<vmem>>, vector<1x128x128xbf16>
    %51 = vector.shape_cast %50 : vector<1x128x128xbf16> to vector<128x128xbf16>
    %cst_34 = arith.constant dense<0.000000e+00> : vector<16x128xf32>
    %52 = tpu.matmul %49, %51, %cst_34 {dimension_numbers = #tpu.dot_dimension_numbers<[1], [0], [0], [1], [0, 0, 1, 1], [], []>} : vector<16x128xbf16>, vector<128x128xbf16>, vector<16x128xf32> -> vector<16x128xf32>
    %c2_35 = arith.constant 2 : index
    %c0_36 = arith.constant 0 : index
    %c0_37 = arith.constant 0 : index
    %53 = vector.load %arg7[%c2_35, %c0_36, %c0_37] : memref<4x16x128xf32, #tpu.memory_space<vmem>>, vector<1x16x128xf32>
    %54 = vector.shape_cast %53 : vector<1x16x128xf32> to vector<16x128xf32>
    %55 = vector.shape_cast %52 : vector<16x128xf32> to vector<1x16x128xf32>
    tpu.vector_store %arg7[%c2_35, %c0_36, %c0_37], %55 {strides = array<i32>} : memref<4x16x128xf32, #tpu.memory_space<vmem>>, vector<1x16x128xf32>,
    %56 = vector.extract_strided_slice %26 {offsets = [48, 0], sizes = [16, 128], strides = [1, 1]} : vector<64x128xbf16> to vector<16x128xbf16>
    %c3 = arith.constant 3 : index
    %c0_38 = arith.constant 0 : index
    %c0_39 = arith.constant 0 : index
    %57 = vector.load %arg4[%c3, %c0_38, %c0_39] : memref<4x128x128xbf16, #tpu.memory_space<vmem>>, vector<1x128x128xbf16>
    %58 = vector.shape_cast %57 : vector<1x128x128xbf16> to vector<128x128xbf16>
    %cst_40 = arith.constant dense<0.000000e+00> : vector<16x128xf32>
    %59 = tpu.matmul %56, %58, %cst_40 {dimension_numbers = #tpu.dot_dimension_numbers<[1], [0], [0], [1], [0, 0, 1, 1], [], []>} : vector<16x128xbf16>, vector<128x128xbf16>, vector<16x128xf32> -> vector<16x128xf32>
    %c3_41 = arith.constant 3 : index
    %c0_42 = arith.constant 0 : index
    %c0_43 = arith.constant 0 : index
    %60 = vector.load %arg7[%c3_41, %c0_42, %c0_43] : memref<4x16x128xf32, #tpu.memory_space<vmem>>, vector<1x16x128xf32>
    %61 = vector.shape_cast %60 : vector<1x16x128xf32> to vector<16x128xf32>
    %62 = vector.shape_cast %59 : vector<16x128xf32> to vector<1x16x128xf32>
    tpu.vector_store %arg7[%c3_41, %c0_42, %c0_43], %62 {strides = array<i32>} : memref<4x16x128xf32, #tpu.memory_space<vmem>>, vector<1x16x128xf32>,
    return
  }
  func.func @transform_0(%arg0: i32) -> (i32, i32) {
    %c0_i32 = arith.constant 0 : i32
    %c0_i32_0 = arith.constant 0 : i32
    %c0_i32_1 = arith.constant 0 : i32
    return %c0_i32, %c0_i32_0 : i32, i32
  }
  func.func @transform_1(%arg0: i32) -> (i32, i32, i32) {
    %c0_i32 = arith.constant 0 : i32
    %c0_i32_0 = arith.constant 0 : i32
    %c0_i32_1 = arith.constant 0 : i32
    %c0_i32_2 = arith.constant 0 : i32
    return %c0_i32, %c0_i32_0, %c0_i32_1 : i32, i32, i32
  }
  func.func @transform_2(%arg0: i32) -> (i32, i32) {
    %c0_i32 = arith.constant 0 : i32
    %c0_i32_0 = arith.constant 0 : i32
    %c0_i32_1 = arith.constant 0 : i32
    return %c0_i32, %c0_i32_0 : i32, i32
  }
  func.func @transform_3(%arg0: i32) -> (i32, i32, i32) {
    %c0_i32 = arith.constant 0 : i32
    %c0_i32_0 = arith.constant 0 : i32
    %c0_i32_1 = arith.constant 0 : i32
    %c0_i32_2 = arith.constant 0 : i32
    return %c0_i32, %c0_i32_0, %c0_i32_1 : i32, i32, i32
  }
  func.func @transform_4(%arg0: i32) -> (i32, i32, i32) {
    %c0_i32 = arith.constant 0 : i32
    %c0_i32_0 = arith.constant 0 : i32
    %c0_i32_1 = arith.constant 0 : i32
    %c0_i32_2 = arith.constant 0 : i32
    return %c0_i32, %c0_i32_0, %c0_i32_1 : i32, i32, i32
  }
  func.func @transform_5(%arg0: i32) -> i32 {
    %c0_i32 = arith.constant 0 : i32
    %c0_i32_0 = arith.constant 0 : i32
    return %c0_i32 : i32
  }
  func.func @transform_6(%arg0: i32) -> (i32, i32, i32) {
    %c0_i32 = arith.constant 0 : i32
    %c0_i32_0 = arith.constant 0 : i32
    %c0_i32_1 = arith.constant 0 : i32
    %c0_i32_2 = arith.constant 0 : i32
    return %c0_i32, %c0_i32_0, %c0_i32_1 : i32, i32, i32
  }
}

</mosaic_0001>

<bundles_post_ra>
// kernel: _audio_pair_transform_impl.1
= control target key start
LH: loop header
LB: loop body
LE: loop exit
PB: predicated region body
PF: predicated region fallthrough
CT: control target
= control target key end

     0   :  { %11 = vsyncpa [#allocation3], 0  ;;  %s809_s24 = smov [#allocation2]   ;;  %s1004_s0 = inlined_call_operand.vmem [shape: f32[16,128], index: 0, kind: input, shape index: {}]   ;;  %s1005_s1 = inlined_call_operand.vmem [shape: f32[2,16,128], index: 1, kind: input, shape index: {}]   ;;  %s1006_s2 = inlined_call_operand.vmem [shape: bf16[64,64], index: 2, kind: input, shape index: {}]   ;;  %s1007_s3 = inlined_call_operand.vmem [shape: bf16[4,128,128], index: 3, kind: input, shape index: {}]   ;;  %s1008_s4 = inlined_call_operand.vmem [shape: f32[2,1,128], index: 4, kind: input, shape index: {}]   ;;  %s1009_s5 = inlined_call_operand.vmem [shape: f32[2], index: 5, kind: input, shape index: {}]   ;;  %s1010_s6 = inlined_call_operand.vmem [shape: f32[4,16,128], index: 6, kind: output, shape index: {}]  }
   0x1   :  { %s27_s23 = sshll.u32 %s1009_s5, 4  ;;  %s28_s23 = int_to_ptr.vmem [resolvable:$true] %s27_s23 }
   0x2   :  { %30 = dma.vmem_to_smem %s28_s23, 16, %s809_s24, [#allocation3]  }
   0x3   :  { %807 = dma.done.wait [#allocation3], 16  }
   0x4   :  { %808 = vsyncadd [#allocation3], 4294967280 }
   0x5   :  { %35 = sfence }
   0x6   :  { %v37_v0 = vld [vmem:[%s1004_s0] sm:$0xff]  ;;  %v38_v1 = vld [vmem:[%s1004_s0 + $0x8] sm:$0xff]  ;;  %s538_s29 = sld [smem:[#allocation2 + $0x1]]  ;;  %v539_v12 = vld [vmem:[%s1005_s1 + $0x10] sm:$0xff]  ;;  %vm124_vm0 = vcmask 523264  }
   0x7   :  { %v39_v2 = vmul.f32 1.442695, %v37_v0  ;;  %v41_v3 = vmul.f32 1.442695, %v38_v1  ;;  %v43_v4 = vpack.c.bf16 %v37_v0, %v37_v0  ;;  %v44_v5 = vpack.c.bf16 %v38_v1, %v38_v1  ;;  %s45_s5 = sld [smem:[#allocation2]]  ;;  %v49_v13 = vld [vmem:[%s1005_s1] sm:$0xff] }
   0x8   :  { %v540_v16 = vld [vmem:[%s1005_s1 + $0x18] sm:$0xff]  ;;  %v50_v18 = vld [vmem:[%s1005_s1 + $0x8] sm:$0xff]  ;;  %v744_v47 = vld [vmem:[%s1006_s2] sm:$0xff] }
   0x9   :  { %783 = vpow2.f32 %v39_v2  ;;  %v92_v6 = vunpack.c.l.b16 %v43_v4  ;;  %v93_v7 = vunpack.c.l.b16 %v44_v5  ;;  %v745_v48 = vld [vmem:[%s1006_s2 + $0x8] sm:$0xff]  ;;  %v755_v49 = vld [vmem:[%s1007_s3 + $0x38] sm:$0xff]  ;;  %v754_v50 = vld [vmem:[%s1007_s3 + $0x30] sm:$0xff] }
   0xa   :  { %785 = vpow2.f32 %v41_v3  ;;  %248 = vmatpush.bf16.msra.mxu1 %v755_v49  ;;  %v753_v51 = vld [vmem:[%s1007_s3 + $0x28] sm:$0xff]  ;;  %v752_v52 = vld [vmem:[%s1007_s3 + $0x20] sm:$0xff]  ;;  %v746_v53 = vld [vmem:[%s1006_s2 + $0x10] sm:$0xff] }
   0xb   :  { %v94_v8 = vpack.c.b16 %v93_v7, %v92_v6  ;;  %v747_v54 = vld [vmem:[%s1006_s2 + $0x18] sm:$0xff]  ;;  %v750_v57 = vld [vmem:[%s1007_s3 + $0x10] sm:$0xff]  ;;  %v749_v59 = vld [vmem:[%s1007_s3 + $0x8] sm:$0xff] }
   0xc   :  { %v62_v9 = vstv %s538_s29  ;;  %v751_v55 = vld [vmem:[%s1007_s3 + $0x18] sm:$0xff]  ;;  %v762_v58 = vld [vmem:[%s1007_s3 + $0x70] sm:$0xff]  ;;  %v761_v60 = vld [vmem:[%s1007_s3 + $0x68] sm:$0xff] }
   0xd   :  { %141 = vmatpush.bf16.msra.mxu0 %v94_v8  ;;  %v46_v10 = vstv %s45_s5  ;;  %v763_v56 = vld [vmem:[%s1007_s3 + $0x78] sm:$0xff]  ;;  %v748_v61 = vld [vmem:[%s1007_s3] sm:$0xff]  ;;  %v758_v1 = vld [vmem:[%s1007_s3 + $0x50] sm:$0xff] }
   0xe   :  { %249 = vmatpush.bf16.msra.mxu1 %v754_v50  ;;  %340 = vmatpush.bf16.msra.mxu2 %v763_v56  ;;  %v760_v62 = vld [vmem:[%s1007_s3 + $0x60] sm:$0xff]  ;;  %v759_v63 = vld [vmem:[%s1007_s3 + $0x58] sm:$0xff]  ;;  %v770_v2 = vld [vmem:[%s1007_s3 + $0xb0] sm:$0xff] }
   0xf   :  { %v784_v11 = vpop.eup %783  ;;  %v771_v0 = vld [vmem:[%s1007_s3 + $0xb8] sm:$0xff]  ;;  %v757_v3 = vld [vmem:[%s1007_s3 + $0x48] sm:$0xff]  ;;  %v756_v5 = vld [vmem:[%s1007_s3 + $0x40] sm:$0xff] }
  0x10   :  { %v786_v14 = vpop.eup %785  ;;  %v63_v15 = vmul.f32 %v784_v11, %v62_v9  ;;  %v47_v17 = vmul.f32 %v784_v11, %v46_v10  ;;  %428 = vmatpush.bf16.msra.mxu3 %v771_v0  ;;  %v769_v4 = vld [vmem:[%s1007_s3 + $0xa8] sm:$0xff]  ;;  %v768_v6 = vld [vmem:[%s1007_s3 + $0xa0] sm:$0xff]  ;;  %v767_v7 = vld [vmem:[%s1007_s3 + $0x98] sm:$0xff] }
  0x11   :  { %142 = vmatpush.bf16.msra.mxu0 %v94_v8  ;;  %v64_v19 = vmul.f32 %v786_v14, %v62_v9  ;;  %v48_v20 = vmul.f32 %v786_v14, %v46_v10  ;;  %v779_v8 = vld [vmem:[%s1007_s3 + $0xf8] sm:$0xff]  ;;  %v766_v10 = vld [vmem:[%s1007_s3 + $0x90] sm:$0xff] }
  0x12   :  { %v68_v21 = vadd.f32 %v539_v12, %v63_v15  ;;  %v51_v22 = vadd.f32 %v49_v13, %v47_v17  ;;  %250 = vmatpush.bf16.msra.mxu1 %v753_v51  ;;  %341 = vmatpush.bf16.msra.mxu2 %v762_v58  ;;  %v778_v11 = vld [vmem:[%s1007_s3 + $0xf0] sm:$0xff]  ;;  %v765_v12 = vld [vmem:[%s1007_s3 + $0x88] sm:$0xff]  ;;  %v764_v17 = vld [vmem:[%s1007_s3 + $0x80] sm:$0xff] }
  0x13   :  { %v69_v23 = vadd.f32 %v540_v16, %v64_v19  ;;  %v52_v24 = vadd.f32 %v50_v18, %v48_v20  ;;  %v777_v13 = vld [vmem:[%s1007_s3 + $0xe8] sm:$0xff]  ;;  %v776_v18 = vld [vmem:[%s1007_s3 + $0xe0] sm:$0xff] }
  0x14   :  { %v70_v25 = vmax.f32 %v68_v21, 1.1920929e-07  ;;  %v53_v26 = vmax.f32 %v51_v22, 1.1920929e-07  ;;  %429 = vmatpush.bf16.msra.mxu3 %v770_v2  ;;  %v775_v22 = vld [vmem:[%s1007_s3 + $0xd8] sm:$0xff] }
  0x15   :  { %v71_v27 = vmax.f32 %v69_v23, 1.1920929e-07  ;;  %v54_v28 = vmax.f32 %v52_v24, 1.1920929e-07  ;;  %v774_v24 = vld [vmem:[%s1007_s3 + $0xd0] sm:$0xff] }
  0x16   :  { %787 = vlog2.f32 %v70_v25  ;;  %251 = vmatpush.bf16.msra.mxu1 %v752_v52  ;;  %342 = vmatpush.bf16.msra.mxu2 %v761_v60  ;;  %v773_v25 = vld [vmem:[%s1007_s3 + $0xc8] sm:$0xff]  ;;  %v782_v52 = vld [vmem:[%s1008_s4 + $0x1] ss:$0 sm:$0xff] }
  0x17   :  { %789 = vlog2.f32 %v71_v27 }
  0x18   :  { %791 = vlog2.f32 %v53_v26  ;;  %430 = vmatpush.bf16.msra.mxu3 %v769_v4 }
  0x19   :  { %793 = vlog2.f32 %v54_v28 }
  0x1a   :  { %252 = vmatpush.bf16.msra.mxu1 %v751_v55  ;;  %343 = vmatpush.bf16.msra.mxu2 %v760_v62 }
  0x1c   :  { %v788_v29 = vpop.eup %787  ;;  %431 = vmatpush.bf16.msra.mxu3 %v768_v6 }
  0x1d   :  { %v790_v30 = vpop.eup %789  ;;  %v73_v31 = vmul.f32 0.6931472, %v788_v29  ;;  %v772_v29 = vld [vmem:[%s1007_s3 + $0xc0] sm:$0xff] }
  0x1e   :  { %v792_v32 = vpop.eup %791  ;;  %v75_v33 = vmul.f32 0.6931472, %v790_v30  ;;  %253 = vmatpush.bf16.msra.mxu1 %v750_v57  ;;  %344 = vmatpush.bf16.msra.mxu2 %v759_v63 }
  0x1f   :  { %v794_v34 = vpop.eup %793  ;;  %v76_v35 = vpack.c.bf16 %v73_v31, %v73_v31  ;;  %v56_v36 = vmul.f32 0.6931472, %v792_v32 }
  0x20   :  { %v77_v37 = vpack.c.bf16 %v75_v33, %v75_v33  ;;  %v58_v38 = vmul.f32 0.6931472, %v794_v34  ;;  %432 = vmatpush.bf16.msra.mxu3 %v767_v7 }
  0x21   :  { %v86_v39 = vunpack.c.l.b16 %v76_v35  ;;  %v59_v40 = vpack.c.bf16 %v56_v36, %v56_v36 }
  0x22   :  { %v87_v41 = vunpack.c.l.b16 %v77_v37  ;;  %v60_v42 = vpack.c.bf16 %v58_v38, %v58_v38  ;;  %254 = vmatpush.bf16.msra.mxu1 %v749_v59  ;;  %345 = vmatpush.bf16.msra.mxu2 %v758_v1 }
  0x23   :  { %v80_v43 = vunpack.c.l.b16 %v59_v40 }
  0x24   :  { %v88_v44 = vpack.c.b16 %v87_v41, %v86_v39  ;;  %v81_v45 = vunpack.c.l.b16 %v60_v42  ;;  %433 = vmatpush.bf16.msra.mxu3 %v766_v10 }
  0x26   :  { %143 = vmatpush.bf16.msra.mxu0 %v88_v44  ;;  %v82_v46 = vpack.c.b16 %v81_v45, %v80_v43  ;;  %255 = vmatpush.bf16.msra.mxu1 %v748_v61 }
  0x27   :  { %346 = vmatpush.bf16.msra.mxu2 %v757_v3 }
  0x28   :  { %434 = vmatpush.bf16.msra.mxu3 %v765_v12 }
  0x2a   :  { %144 = vmatpush.bf16.msra.mxu0 %v82_v46  ;;  %516 = vmatpush.bf16.msrb.mxu1 %v779_v8 }
  0x2b   :  { %347 = vmatpush.bf16.msra.mxu2 %v756_v5 }
  0x2c   :  { %435 = vmatpush.bf16.msra.mxu3 %v764_v17 }
  0x2d   :  { %557 = vmatmul.msk.bf16.vlgmr.msra.gmra.mxu0 %vm124_vm0, %v744_v47  ;;  %v781_v47 = vld [vmem:[%s1008_s4] ss:$0 sm:$0xff] }
  0x2e   :  { %517 = vmatpush.bf16.msrb.mxu1 %v778_v11 }
  0x32   :  { %518 = vmatpush.bf16.msrb.mxu1 %v777_v13 }
  0x36   :  { %519 = vmatpush.bf16.msrb.mxu1 %v776_v18 }
  0x3a   :  { %520 = vmatpush.bf16.msrb.mxu1 %v775_v22 }
  0x3d   :  { %558 = vmatmul.msk.bf16.gmra.mxu0 %vm124_vm0, %v745_v48 }
  0x3e   :  { %521 = vmatpush.bf16.msrb.mxu1 %v774_v24 }
  0x42   :  { %522 = vmatpush.bf16.msrb.mxu1 %v773_v25 }
  0x46   :  { %523 = vmatpush.bf16.msrb.mxu1 %v772_v29 }
  0x4d   :  { %559 = vmatmul.msk.bf16.gmra.mxu0 %vm124_vm0, %v746_v53 }
  0x5d   :  { %560 = vmatmul.msk.bf16.gmra.mxu0 %vm124_vm0, %v747_v54 }
  0xaa   :  { %v146_v9 = vpop.f32.mrf.mxu0 }
  0xab   :  { %v166_v14 = vpack.c.bf16 %v146_v9, %v146_v9 }
  0xad   :  { %v196_v19 = vunpack.c.l.b16 %v166_v14 }
  0xb2   :  { %v148_v15 = vpop.f32.mrf.mxu0 }
  0xb3   :  { %v167_v16 = vpack.c.bf16 %v148_v15, %v148_v15 }
  0xb5   :  { %v197_v20 = vunpack.c.l.b16 %v167_v16 }
  0xb7   :  { %v198_v21 = vpack.c.b16 %v197_v20, %v196_v19 }
  0xb9   :  { %256 = vmatmul.bf16.vlgmr.msra.gmra.mxu1 %v198_v21 }
  0xba   :  { %v151_v23 = vpop.f32.mrf.mxu0 }
  0xbb   :  { %v168_v26 = vpack.c.bf16 %v151_v23, %v151_v23 }
  0xbd   :  { %v288_v30 = vunpack.c.l.b16 %v168_v26 }
  0xc2   :  { %v153_v27 = vpop.f32.mrf.mxu0 }
  0xc3   :  { %v169_v28 = vpack.c.bf16 %v153_v27, %v153_v27 }
  0xc5   :  { %v289_v31 = vunpack.c.l.b16 %v169_v28 }
  0xc7   :  { %v290_v32 = vpack.c.b16 %v289_v31, %v288_v30 }
  0xc9   :  { %348 = vmatmul.bf16.vlgmr.msra.gmra.mxu2 %v290_v32 }
  0xca   :  { %v156_v33 = vpop.f32.mrf.mxu0 }
  0xcb   :  { %v170_v34 = vpack.c.bf16 %v156_v33, %v156_v33 }
  0xcd   :  { %v376_v37 = vunpack.c.l.b16 %v170_v34 }
  0xd2   :  { %v158_v35 = vpop.f32.mrf.mxu0 }
  0xd3   :  { %v171_v36 = vpack.c.bf16 %v158_v35, %v158_v35 }
  0xd5   :  { %v377_v38 = vunpack.c.l.b16 %v171_v36 }
  0xd7   :  { %v378_v39 = vpack.c.b16 %v377_v38, %v376_v37 }
  0xd9   :  { %436 = vmatmul.bf16.vlgmr.msra.gmra.mxu3 %v378_v39 }
  0xda   :  { %v161_v40 = vpop.f32.mrf.mxu0 }
  0xdb   :  { %v172_v41 = vpack.c.bf16 %v161_v40, %v161_v40 }
  0xdd   :  { %v464_v44 = vunpack.c.l.b16 %v172_v41 }
  0xe2   :  { %v163_v42 = vpop.f32.mrf.mxu0 }
  0xe3   :  { %v173_v43 = vpack.c.bf16 %v163_v42, %v163_v42 }
  0xe5   :  { %v465_v45 = vunpack.c.l.b16 %v173_v43 }
  0xe7   :  { %v466_v46 = vpack.c.b16 %v465_v45, %v464_v44 }
  0xe9   :  { %524 = vmatmul.bf16.vlgmr.msrb.gmra.mxu1 %v466_v46 }
 0x136   :  { %v257_v48 = vpop.f32.mrf.mxu1 }
 0x137   :  { %v258_v49 = vadd.f32 %v781_v47, %v257_v48 }
 0x139   :  { %262 = vst [vmem:[%s1010_s6] sm:$0xff] %v258_v49 }
 0x13e   :  { %v259_v50 = vpop.f32.mrf.mxu1 }
 0x13f   :  { %v260_v51 = vadd.f32 %v781_v47, %v259_v50 }
 0x141   :  { %263 = vst [vmem:[%s1010_s6 + $0x8] sm:$0xff] %v260_v51 }
 0x14c   :  { %v349_v53 = vpop.f32.mrf.mxu2 }
 0x14d   :  { %v350_v54 = vadd.f32 %v782_v52, %v349_v53 }
 0x14f   :  { %642 = vst [vmem:[%s1010_s6 + $0x10] sm:$0xff] %v350_v54 }
 0x154   :  { %v351_v55 = vpop.f32.mrf.mxu2 }
 0x155   :  { %v352_v56 = vadd.f32 %v782_v52, %v351_v55 }
 0x157   :  { %643 = vst [vmem:[%s1010_s6 + $0x18] sm:$0xff] %v352_v56 }
 0x15c   :  { %v437_v57 = vpop.f32.mrf.mxu3 }
 0x15d   :  { %692 = vst [vmem:[%s1010_s6 + $0x20] sm:$0xff] %v437_v57 }
 0x164   :  { %v439_v58 = vpop.f32.mrf.mxu3 }
 0x165   :  { %693 = vst [vmem:[%s1010_s6 + $0x28] sm:$0xff] %v439_v58 }
 0x166   :  { %v525_v59 = vpop.f32.mrf.mxu1 }
 0x167   :  { %742 = vst [vmem:[%s1010_s6 + $0x30] sm:$0xff] %v525_v59 }
 0x16e   :  { %v527_v60 = vpop.f32.mrf.mxu1 }
 0x16f   :  { %743 = vst [vmem:[%s1010_s6 + $0x38] sm:$0xff] %v527_v60 }
 0x170   :  { %537 = vsyncpa [#allocation3], 1 }

</bundles_post_ra>
